<compile_context>
chip_gen: v5e
topology: v5e:2x2
jax: 0.10.0
libtpu: 0.0.40
codegen_flags: <defaults>
</compile_context>

<pallas_src>
import functools

import jax
import jax.numpy as jnp
from jax.experimental import pallas as pl
from jax.experimental.pallas import tpu as pltpu

PAD = 128   # lane width used for the packed feature dimension
H = 32      # per-head hidden width (fused hidden width = 2*H = 64)


# --------------------------------------------------------------------------- #
# Kernel
# --------------------------------------------------------------------------- #
def _fused_actor_critic_kernel(x_ref, w_ref, b_ref, out_ref, *,
                               action_space, out_lanes):
    """Fused policy+value MLP.

    x_ref   : (TILE_B, 128) bf16 — obs features in lanes [0:obs), zeros elsewhere
    w_ref   : (3, 128, 128) bf16 — zero-padded fused weights, layer on axis 0
    b_ref   : (8, 128)      f32  — rows 0..2 hold the fused per-layer biases
    out_ref : (TILE_B, out_lanes) f32 — lanes [0:ACT) = log_softmax(logits),
                                        lane ACT = value, rest = padding
    """
    x = x_ref[...]                      # bf16
    b = b_ref[...]                      # f32

    # Three MXU passes with bf16 operands, f32 accumulation.  Padding columns
    # are zero, tanh(0)=0 and padded weight rows are zero, so padding is inert.
    h1 = jnp.tanh(jnp.dot(x, w_ref[0],
                          preferred_element_type=jnp.float32) + b[0:1, :])
    h2 = jnp.tanh(jnp.dot(h1.astype(jnp.bfloat16), w_ref[1],
                          preferred_element_type=jnp.float32) + b[1:2, :])
    raw = (jnp.dot(h2.astype(jnp.bfloat16), w_ref[2],
                   preferred_element_type=jnp.float32) + b[2:3, :])

    # lanes [0:ACT) = policy logits, lane ACT = value, rest = padding.
    lane = jax.lax.broadcasted_iota(jnp.int32, raw.shape, 1)
    is_logit = lane < action_space

    # Numerically stable log_softmax over the first `action_space` lanes (f32).
    masked = jnp.where(is_logit, raw, jnp.float32(-1e30))
    m = jnp.max(masked, axis=-1, keepdims=True)
    shifted = masked - m
    lse = jnp.log(jnp.sum(jnp.exp(shifted), axis=-1, keepdims=True))
    log_p = shifted - lse

    # log_p in logit lanes, raw (value) elsewhere; store only the useful lanes.
    res = jnp.where(is_logit, log_p, raw)
    out_ref[...] = res[:, :out_lanes]


# --------------------------------------------------------------------------- #
# Host-side packing (call ONCE per parameter update) + wrapper
# --------------------------------------------------------------------------- #
def _round_up(x, m):
    return (x + m - 1) // m * m


def pack_params(params):
    """Fuse the 12 per-head tensors into one bf16 weight stack + one f32 bias
    block.  Hoist this out of the rollout loop: pack once per param update."""
    w1 = jnp.concatenate([params["pw1"], params["vw1"]], axis=1)          # (obs, 64)
    w2 = jax.scipy.linalg.block_diag(params["pw2"], params["vw2"])        # (64, 64)
    w3 = jax.scipy.linalg.block_diag(params["pw3"], params["vw3"])        # (64, A+1)
    b1 = jnp.concatenate([params["pb1"], params["vb1"]], axis=1)          # (1, 64)
    b2 = jnp.concatenate([params["pb2"], params["vb2"]], axis=1)          # (1, 64)
    b3 = jnp.concatenate([params["pb3"], params["vb3"]], axis=1)          # (1, A+1)

    def pad2(a):
        out = jnp.zeros((PAD, PAD), jnp.bfloat16)
        return out.at[:a.shape[0], :a.shape[1]].set(a.astype(jnp.bfloat16))

    w_stack = jnp.stack([pad2(w1), pad2(w2), pad2(w3)])                   # (3,128,128) bf16

    b_pack = jnp.zeros((8, PAD), jnp.float32)
    b_pack = b_pack.at[0, :b1.shape[1]].set(b1[0].astype(jnp.float32))
    b_pack = b_pack.at[1, :b2.shape[1]].set(b2[0].astype(jnp.float32))
    b_pack = b_pack.at[2, :b3.shape[1]].set(b3[0].astype(jnp.float32))
    return w_stack, b_pack


@functools.partial(jax.jit, static_argnames=("action_space", "max_tile_b"))
def actor_critic_forward(x, w_stack, b_pack, *, action_space, max_tile_b=1024):
    """x: (B, obs_space) f32. Returns (log_p (B, A) f32, v (B, 1) f32)."""
    B, obs = x.shape
    assert obs <= PAD and action_space + 1 <= PAD

    # Batch tiling: >=2 grid steps (v7x megacore split), tiles <= max_tile_b,
    # batch padding kept small by deriving tile_b from cdiv(B, n_steps).
    b8 = _round_up(B, 8)
    n_steps = max(2, pl.cdiv(b8, max_tile_b))
    tile_b = _round_up(pl.cdiv(b8, n_steps), 8)
    b_pad = tile_b * n_steps

    # Stream x in bf16 (half the input HBM bytes); kernel accumulates in f32.
    x_pad = jnp.zeros((b_pad, PAD), jnp.bfloat16).at[:B, :obs].set(
        x.astype(jnp.bfloat16))

    out_lanes = _round_up(action_space + 1, 8)   # narrow f32 output writeback

    cost = pl.CostEstimate(
        flops=2 * b_pad * PAD * PAD * 3,                 # three 128x128 matmuls
        transcendentals=3 * b_pad * PAD,                 # 2x tanh + 1x exp
        bytes_accessed=(2 * x_pad.size + 2 * w_stack.size
                        + 4 * b_pack.size + 4 * b_pad * out_lanes),
    )

    kernel = functools.partial(_fused_actor_critic_kernel,
                               action_space=action_space,
                               out_lanes=out_lanes)

    out = pl.pallas_call(
        kernel,
        grid=(n_steps,),
        in_specs=[
            pl.BlockSpec((tile_b, PAD), lambda i: (i, 0)),        # x tile (bf16)
            pl.BlockSpec((3, PAD, PAD), lambda i: (0, 0, 0)),     # resident weights
            pl.BlockSpec((8, PAD), lambda i: (0, 0)),             # resident biases
        ],
        out_specs=pl.BlockSpec((tile_b, out_lanes), lambda i: (i, 0)),
        out_shape=jax.ShapeDtypeStruct((b_pad, out_lanes), jnp.float32),
        compiler_params=pltpu.CompilerParams(
            dimension_semantics=("parallel",)),
        cost_estimate=cost,
    )(x_pad, w_stack, b_pack)

    log_p = out[:B, :action_space]
    v = out[:B, action_space:action_space + 1]
    return log_p, v


# --------------------------------------------------------------------------- #
# Init + pure-JAX references
# --------------------------------------------------------------------------- #
def init_params(key, obs_space, action_space, h=32):
    """nn.Linear-style init; weights stored (in, out) so y = x @ W + b."""
    def linear(k, fan_in, fan_out):
        kw, kb = jax.random.split(k)
        bound = 1.0 / jnp.sqrt(fan_in)
        w = jax.random.uniform(kw, (fan_in, fan_out), jnp.float32, -bound, bound)
        b = jax.random.uniform(kb, (1, fan_out), jnp.float32, -bound, bound)
        return w, b

    keys = jax.random.split(key, 6)
    pw1, pb1 = linear(keys[0], obs_space, h)
    pw2, pb2 = linear(keys[1], h, h)
    pw3, pb3 = linear(keys[2], h, action_space)
    vw1, vb1 = linear(keys[3], obs_space, h)
    vw2, vb2 = linear(keys[4], h, h)
    vw3, vb3 = linear(keys[5], h, 1)
    return dict(pw1=pw1, pb1=pb1, pw2=pw2, pb2=pb2, pw3=pw3, pb3=pb3,
                vw1=vw1, vb1=vb1, vw2=vw2, vb2=vb2, vw3=vw3, vb3=vb3)


def reference_forward(x, p):
    """Exact f32 PyTorch semantics."""
    hpol = jnp.tanh(x @ p["pw1"] + p["pb1"])
    hpol = jnp.tanh(hpol @ p["pw2"] + p["pb2"])
    logit = hpol @ p["pw3"] + p["pb3"]
    log_p = jax.nn.log_softmax(logit, axis=-1)
    hval = jnp.tanh(x @ p["vw1"] + p["vb1"])
    hval = jnp.tanh(hval @ p["vw2"] + p["vb2"])
    v = hval @ p["vw3"] + p["vb3"]
    return log_p, v.reshape(x.shape[0], 1)


def reference_forward_bf16(x, p):
    """Same math with bf16 dot operands / f32 accumulation (kernel numerics)."""
    bf = jnp.bfloat16

    def lin(a, w, b):
        return jnp.dot(a.astype(bf), w.astype(bf),
                       preferred_element_type=jnp.float32) + b

    hpol = jnp.tanh(lin(x, p["pw1"], p["pb1"]))
    hpol = jnp.tanh(lin(hpol, p["pw2"], p["pb2"]))
    logit = lin(hpol, p["pw3"], p["pb3"])
    log_p = jax.nn.log_softmax(logit, axis=-1)
    hval = jnp.tanh(lin(x, p["vw1"], p["vb1"]))
    hval = jnp.tanh(lin(hval, p["vw2"], p["vb2"]))
    v = lin(hval, p["vw3"], p["vb3"])
    return log_p, v.reshape(x.shape[0], 1)


# --------------------------------------------------------------------------- #
if __name__ == "__main__":
    B, OBS, ACT = 8, 16, 4

    key = jax.random.PRNGKey(0)
    kx, kp = jax.random.split(key)
    x = jax.random.normal(kx, (B, OBS), jnp.float32)
    params = init_params(kp, OBS, ACT, h=H)

    # Pack once (outside the per-step forward), then run the fused kernel.
    w_stack, b_pack = pack_params(params)
    log_p, v = actor_critic_forward(x, w_stack, b_pack, action_space=ACT)
    jax.block_until_ready((log_p, v))

    assert log_p.shape == (B, ACT) and v.shape == (B, 1)

    # Tight check against the bf16-matmul reference (kernel numerics).
    ref_log_p_bf, ref_v_bf = reference_forward_bf16(x, params)
    assert jnp.allclose(log_p, ref_log_p_bf, atol=2e-3, rtol=2e-3)
    assert jnp.allclose(v, ref_v_bf, atol=2e-3, rtol=2e-3)

    # Looser check against the exact f32 PyTorch semantics.
    ref_log_p, ref_v = reference_forward(x, params)
    assert jnp.allclose(log_p, ref_log_p, atol=5e-2, rtol=5e-2)
    assert jnp.allclose(v, ref_v, atol=5e-2, rtol=5e-2)

    print("KERNEL_OK")
</pallas_src>

<mosaic_0001>
module attributes {stable_mosaic.version = 11 : i64} {
  func.func @_fused_actor_critic_kernel(%arg0: i32, %arg1: memref<8x128xbf16, #tpu.memory_space<vmem>>, %arg2: memref<3x128x128xbf16, #tpu.memory_space<vmem>>, %arg3: memref<8x128xf32, #tpu.memory_space<vmem>>, %arg4: memref<8x8xf32, #tpu.memory_space<vmem>>) attributes {dimension_semantics = [#tpu.dimension_semantics<parallel>], iteration_bounds = array<i64: 2>, scalar_prefetch = 0 : i64, scratch_operands = 0 : i64, tpu.core_type = #tpu.core_type<tc>, window_params = [{transform_indices = @transform_0, window_bounds = array<i64: 8, 128>}, {pipeline_mode = #tpu.pipeline_mode<synchronous>, transform_indices = @transform_1, window_bounds = array<i64: 3, 128, 128>}, {pipeline_mode = #tpu.pipeline_mode<synchronous>, transform_indices = @transform_2, window_bounds = array<i64: 8, 128>}, {transform_indices = @transform_3, window_bounds = array<i64: 8, 8>}]} {
    %c0 = arith.constant 0 : index
    %c0_0 = arith.constant 0 : index
    %0 = vector.load %arg1[%c0, %c0_0] : memref<8x128xbf16, #tpu.memory_space<vmem>>, vector<8x128xbf16>
    %c0_1 = arith.constant 0 : index
    %c0_2 = arith.constant 0 : index
    %1 = vector.load %arg3[%c0_1, %c0_2] : memref<8x128xf32, #tpu.memory_space<vmem>>, vector<8x128xf32>
    %c0_3 = arith.constant 0 : index
    %c0_4 = arith.constant 0 : index
    %c0_5 = arith.constant 0 : index
    %2 = vector.load %arg2[%c0_3, %c0_4, %c0_5] : memref<3x128x128xbf16, #tpu.memory_space<vmem>>, vector<1x128x128xbf16>
    %3 = vector.shape_cast %2 : vector<1x128x128xbf16> to vector<128x128xbf16>
    %cst = arith.constant dense<0.000000e+00> : vector<8x128xf32>
    %4 = tpu.matmul %0, %3, %cst {dimension_numbers = #tpu.dot_dimension_numbers<[1], [0], [0], [1], [0, 0, 1, 1], [], []>} : vector<8x128xbf16>, vector<128x128xbf16>, vector<8x128xf32> -> vector<8x128xf32>
    %5 = vector.extract_strided_slice %1 {offsets = [0, 0], sizes = [1, 128], strides = [1, 1]} : vector<8x128xf32> to vector<1x128xf32>
    %6 = vector.broadcast %5 : vector<1x128xf32> to vector<8x128xf32>
    %7 = arith.addf %4, %6 : vector<8x128xf32>
    %8 = math.tanh %7 : vector<8x128xf32>
    %9 = arith.truncf %8 : vector<8x128xf32> to vector<8x128xbf16>
    %c1 = arith.constant 1 : index
    %c0_6 = arith.constant 0 : index
    %c0_7 = arith.constant 0 : index
    %10 = vector.load %arg2[%c1, %c0_6, %c0_7] : memref<3x128x128xbf16, #tpu.memory_space<vmem>>, vector<1x128x128xbf16>
    %11 = vector.shape_cast %10 : vector<1x128x128xbf16> to vector<128x128xbf16>
    %cst_8 = arith.constant dense<0.000000e+00> : vector<8x128xf32>
    %12 = tpu.matmul %9, %11, %cst_8 {dimension_numbers = #tpu.dot_dimension_numbers<[1], [0], [0], [1], [0, 0, 1, 1], [], []>} : vector<8x128xbf16>, vector<128x128xbf16>, vector<8x128xf32> -> vector<8x128xf32>
    %13 = vector.extract_strided_slice %1 {offsets = [1, 0], sizes = [1, 128], strides = [1, 1]} : vector<8x128xf32> to vector<1x128xf32>
    %14 = vector.broadcast %13 : vector<1x128xf32> to vector<8x128xf32>
    %15 = arith.addf %12, %14 : vector<8x128xf32>
    %16 = math.tanh %15 : vector<8x128xf32>
    %17 = arith.truncf %16 : vector<8x128xf32> to vector<8x128xbf16>
    %c2 = arith.constant 2 : index
    %c0_9 = arith.constant 0 : index
    %c0_10 = arith.constant 0 : index
    %18 = vector.load %arg2[%c2, %c0_9, %c0_10] : memref<3x128x128xbf16, #tpu.memory_space<vmem>>, vector<1x128x128xbf16>
    %19 = vector.shape_cast %18 : vector<1x128x128xbf16> to vector<128x128xbf16>
    %cst_11 = arith.constant dense<0.000000e+00> : vector<8x128xf32>
    %20 = tpu.matmul %17, %19, %cst_11 {dimension_numbers = #tpu.dot_dimension_numbers<[1], [0], [0], [1], [0, 0, 1, 1], [], []>} : vector<8x128xbf16>, vector<128x128xbf16>, vector<8x128xf32> -> vector<8x128xf32>
    %21 = vector.extract_strided_slice %1 {offsets = [2, 0], sizes = [1, 128], strides = [1, 1]} : vector<8x128xf32> to vector<1x128xf32>
    %22 = vector.broadcast %21 : vector<1x128xf32> to vector<8x128xf32>
    %23 = arith.addf %20, %22 : vector<8x128xf32>
    %24 = tpu.iota {dimensions = array<i32: 1>} : vector<8x128xi32>
    %c4_i32 = arith.constant 4 : i32
    %25 = vector.broadcast %c4_i32 : i32 to vector<8x128xi32>
    %26 = arith.cmpi slt, %24, %25 : vector<8x128xi32>
    %cst_12 = arith.constant -1.000000e+30 : f32
    %27 = vector.broadcast %cst_12 : f32 to vector<8x128xf32>
    %28 = arith.select %26, %23, %27 : vector<8x128xi1>, vector<8x128xf32>
    %cst_13 = arith.constant dense<0xFF800000> : vector<8xf32>
    %29 = vector.multi_reduction <maximumf>, %28, %cst_13 [1] : vector<8x128xf32> to vector<8xf32>
    %30 = vector.shape_cast %29 : vector<8xf32> to vector<8x1xf32>
    %31 = vector.broadcast %30 : vector<8x1xf32> to vector<8x128xf32>
    %32 = arith.subf %28, %31 : vector<8x128xf32>
    %33 = math.exp %32 : vector<8x128xf32>
    %cst_14 = arith.constant dense<0.000000e+00> : vector<8xf32>
    %34 = vector.multi_reduction <add>, %33, %cst_14 [1] : vector<8x128xf32> to vector<8xf32>
    %35 = vector.shape_cast %34 : vector<8xf32> to vector<8x1xf32>
    %36 = math.log %35 : vector<8x1xf32>
    %37 = vector.broadcast %36 : vector<8x1xf32> to vector<8x128xf32>
    %38 = arith.subf %32, %37 : vector<8x128xf32>
    %39 = arith.select %26, %38, %23 : vector<8x128xi1>, vector<8x128xf32>
    %40 = vector.extract_strided_slice %39 {offsets = [0, 0], sizes = [8, 8], strides = [1, 1]} : vector<8x128xf32> to vector<8x8xf32>
    %c0_15 = arith.constant 0 : index
    %c0_16 = arith.constant 0 : index
    %41 = vector.load %arg4[%c0_15, %c0_16] : memref<8x8xf32, #tpu.memory_space<vmem>>, vector<8x8xf32>
    tpu.vector_store %arg4[%c0_15, %c0_16], %40 {strides = array<i32>} : memref<8x8xf32, #tpu.memory_space<vmem>>, vector<8x8xf32>,
    return
  }
  func.func @transform_0(%arg0: i32) -> (i32, i32) {
    %c0_i32 = arith.constant 0 : i32
    %c0_i32_0 = arith.constant 0 : i32
    return %arg0, %c0_i32 : i32, i32
  }
  func.func @transform_1(%arg0: i32) -> (i32, i32, i32) {
    %c0_i32 = arith.constant 0 : i32
    %c0_i32_0 = arith.constant 0 : i32
    %c0_i32_1 = arith.constant 0 : i32
    %c0_i32_2 = arith.constant 0 : i32
    return %c0_i32, %c0_i32_0, %c0_i32_1 : i32, i32, i32
  }
  func.func @transform_2(%arg0: i32) -> (i32, i32) {
    %c0_i32 = arith.constant 0 : i32
    %c0_i32_0 = arith.constant 0 : i32
    %c0_i32_1 = arith.constant 0 : i32
    return %c0_i32, %c0_i32_0 : i32, i32
  }
  func.func @transform_3(%arg0: i32) -> (i32, i32) {
    %c0_i32 = arith.constant 0 : i32
    %c0_i32_0 = arith.constant 0 : i32
    return %arg0, %c0_i32 : i32, i32
  }
}

</mosaic_0001>

<bundles_post_ra>
// kernel: actor_critic_forward.1
= control target key start
LH: loop header
LB: loop body
LE: loop exit
PB: predicated region body
PF: predicated region fallthrough
CT: control target
= control target key end

     0   :  { %8 = vsyncpa [#allocation3], 0  ;;  %s732_s12 = smov 0   ;;  %s766_s0 = inlined_call_operand.vmem [shape: bf16[16,128], index: 0, kind: input, shape index: {}]   ;;  %s767_s1 = inlined_call_operand.hbm [shape: bf16[3,128,128], index: 1, kind: input, shape index: {}]   ;;  %s768_s2 = inlined_call_operand.vmem [shape: f32[8,128], index: 2, kind: input, shape index: {}]   ;;  %s769_s3 = inlined_call_operand.vmem [shape: f32[16,8], index: 3, kind: output, shape index: {}]  }
   0x1 LB: > { %s124_s15 = sshll.u32 %s767_s1, 4  ;;  %s741_s16 = sadd.s32 4294967295, %s707_s12   ;;  %s707_s12 = sphi %s732_s12, %s14_s12   ;;  %s125_s15 = int_to_ptr.hbm [resolvable:$true] %s124_s15 }
   0x2   : > { %p509_p0 = scmp.ge.s32.totalorder %s707_s12, 1  ;;  %p113_p1 = scmp.lt.s32.totalorder %s707_s12, 3 }
   0x3   : > { %p646_p2 = scmp.eq.s32.totalorder %s741_s16, 0  ;;  %s709_s17 = smov [#allocation2]  }
   0x4   : > { %p114_p3 = pnand %p509_p0, %p113_p1  ;;  %s126_s18 = sshll.u32 %s709_s17, 4  ;;  %s127_s18 = int_to_ptr.vmem [resolvable:$true] %s126_s18 }
   0x5   : > { %s710_s19 = smov 64   ;;  %s711_s20 = smov 4  }
   0x6   : > { %p642_p4 = pneg %p114_p3  ;;  %152 = sbr.rel (%p114_p3) target bundleno = 709 (0x2c5), region = 32 }
   0x8   : > { %p643_p5 = pnand %p646_p2, %p642_p4 }
   0xa   : > { %645 = dma.hbm_to_vmem [thread:$0]  (!%p643_p5), %s125_s15, 3072, %s127_s18, [#allocation3], %s710_s19, %s710_s19, %s711_s20  }
   0xb   : > { %702 = dma.done.wait (%p646_p2), [#allocation3], 3072  }
   0xc   : > { %704 = vsyncadd (%p646_p2), [#allocation3], 4294964224  ;;  %v621_v0 = vld [vmem:[#allocation2 + $0x38] sm:$0xff]  ;;  %v620_v1 = vld [vmem:[#allocation2 + $0x30] sm:$0xff]  ;;  %p175_p6 = scmp.lt.s32.totalorder %s741_s16, 1  ;;  %v425_v38 = vlaneseq  ;;  %vm440_vm1 = vcmask 64512  }
   0xd   : > { %250 = vmatpush.bf16.msra.mxu0 %v621_v0  ;;  %v629_v2 = vld [vmem:[#allocation2 + $0x78] sm:$0xff]  ;;  %v628_v3 = vld [vmem:[#allocation2 + $0x70] sm:$0xff]  ;;  %v619_v4 = vld [vmem:[#allocation2 + $0x28] sm:$0xff] }
   0xe   : > { %331 = vmatpush.bf16.msra.mxu1 %v629_v2  ;;  %v627_v5 = vld [vmem:[#allocation2 + $0x68] sm:$0xff]  ;;  %v618_v6 = vld [vmem:[#allocation2 + $0x20] sm:$0xff]  ;;  %v617_v8 = vld [vmem:[#allocation2 + $0x18] sm:$0xff]  ;;  %s771_s16 = smov (!%p175_p6, %s741_s16), 1  ;;  %v426_v39 = vand.u32 127, %v425_v38 }
   0xf   : > { %v626_v7 = vld [vmem:[#allocation2 + $0x60] sm:$0xff]  ;;  %v625_v9 = vld [vmem:[#allocation2 + $0x58] sm:$0xff]  ;;  %v616_v10 = vld [vmem:[#allocation2 + $0x10] sm:$0xff]  ;;  %s514_s21 = sshll.u32 %s771_s16, 2  ;;  %s515_s27 = sshll.u32 %s771_s16, 3 }
  0x10   : > { %v615_v11 = vld [vmem:[#allocation2 + $0x8] sm:$0xff]  ;;  %v614_v12 = vld [vmem:[#allocation2] sm:$0xff]  ;;  %s178_s24 = scalar_lea.vmem %s766_s0, %s514_s21  ;;  %v624_v14 = vld [vmem:[#allocation2 + $0x50] sm:$0xff]  ;;  %vm427_vm0 = vcmp.lt.s32.totalorder %v426_v39, 4  ;;  %s182_s30 = scalar_lea.vmem %s769_s3, %s515_s27 }
  0x11   : > { %251 = vmatpush.bf16.msra.mxu0 %v620_v1  ;;  %v183_v13 = vld [vmem:[%s178_s24] sm:$0xf]  ;;  %v623_v15 = vld [vmem:[#allocation2 + $0x48] sm:$0xff]  ;;  %v637_v17 = vld [vmem:[#allocation2 + $0xb8] sm:$0xff] }
  0x12   : > { %332 = vmatpush.bf16.msra.mxu1 %v628_v3  ;;  %v622_v16 = vld [vmem:[#allocation2 + $0x40] sm:$0xff]  ;;  %412 = vmatpush.bf16.msra.mxu2 %v637_v17  ;;  %v636_v18 = vld [vmem:[#allocation2 + $0xb0] sm:$0xff]  ;;  %v635_v19 = vld [vmem:[#allocation2 + $0xa8] sm:$0xff] }
  0x13   : > { %v634_v20 = vld [vmem:[#allocation2 + $0xa0] sm:$0xff]  ;;  %v633_v22 = vld [vmem:[#allocation2 + $0x98] sm:$0xff]  ;;  %v632_v29 = vld [vmem:[#allocation2 + $0x90] sm:$0xff] }
  0x14   : > { %v184_v21 = vld [vmem:[%s768_s2] sm:$0xff]  ;;  %v631_v30 = vld [vmem:[#allocation2 + $0x88] sm:$0xff] }
  0x15   : > { %252 = vmatpush.bf16.msra.mxu0 %v619_v4  ;;  %v201_v23 = vperm.slane %v184_v21, 0  ;;  %v630_v31 = vld [vmem:[#allocation2 + $0x80] sm:$0xff]  ;;  %v282_v32 = vperm.slane %v184_v21, 1  ;;  %v363_v40 = vperm.slane %v184_v21, 2 }
  0x16   : > { %333 = vmatpush.bf16.msra.mxu1 %v627_v5  ;;  %413 = vmatpush.bf16.msra.mxu2 %v636_v18 }
  0x19   : > { %253 = vmatpush.bf16.msra.mxu0 %v618_v6 }
  0x1a   : > { %334 = vmatpush.bf16.msra.mxu1 %v626_v7  ;;  %414 = vmatpush.bf16.msra.mxu2 %v635_v19 }
  0x1d   : > { %254 = vmatpush.bf16.msra.mxu0 %v617_v8 }
  0x1e   : > { %335 = vmatpush.bf16.msra.mxu1 %v625_v9  ;;  %415 = vmatpush.bf16.msra.mxu2 %v634_v20 }
  0x21   : > { %255 = vmatpush.bf16.msra.mxu0 %v616_v10 }
  0x22   : > { %336 = vmatpush.bf16.msra.mxu1 %v624_v14  ;;  %416 = vmatpush.bf16.msra.mxu2 %v633_v22 }
  0x25   : > { %256 = vmatpush.bf16.msra.mxu0 %v615_v11 }
  0x26   : > { %337 = vmatpush.bf16.msra.mxu1 %v623_v15  ;;  %417 = vmatpush.bf16.msra.mxu2 %v632_v29 }
  0x29   : > { %257 = vmatpush.bf16.msra.mxu0 %v614_v12 }
  0x2a   : > { %338 = vmatpush.bf16.msra.mxu1 %v622_v16  ;;  %418 = vmatpush.bf16.msra.mxu2 %v631_v30 }
  0x2c   : > { %258 = vmatmul.bf16.vlgmr.msra.gmra.mxu0 %v183_v13 }
  0x2e   : > { %419 = vmatpush.bf16.msra.mxu2 %v630_v31 }
  0xa9   : > { %v259_v24 = vpop.f32.mrf.mxu0 }
  0xaa   : > { %v260_v25 = vadd.f32 %v259_v24, %v201_v23 }
  0xac   : > { %659 = vtanh.f32 %v260_v25 }
  0xb1   : > { %v261_v26 = vpop.f32.mrf.mxu0 }
  0xb2   : > { %v660_v27 = vpop.eup %659 }
  0xb3   : > { %v264_v28 = vpack.c.bf16 %v660_v27, %v660_v27 }
  0xb5   : > { %339 = vmatmul.bf16.vlgmr.msra.gmra.mxu1 %v264_v28 }
 0x132   : > { %v340_v33 = vpop.f32.mrf.mxu1 }
 0x133   : > { %v341_v34 = vadd.f32 %v340_v33, %v282_v32 }
 0x135   : > { %661 = vtanh.f32 %v341_v34 }
 0x13a   : > { %v342_v35 = vpop.f32.mrf.mxu1 }
 0x13b   : > { %v662_v36 = vpop.eup %661 }
 0x13c   : > { %v345_v37 = vpack.c.bf16 %v662_v36, %v662_v36 }
 0x13e   : > { %420 = vmatmul.bf16.vlgmr.msra.gmra.mxu2 %v345_v37 }
 0x1c1   : > { %v421_v41 = vpop.f32.mrf.mxu2 }
 0x1c2   : > { %v422_v42 = vadd.f32 %v421_v41, %v363_v40 }
 0x1c4   : > { %v428_v43 = vsel %vm427_vm0, %v422_v42, -1e+30 }
 0x1c5   : > { %429 = vmax.xlane.f32.xlu0 %v428_v43 }
 0x1c9   : > { %v423_v44 = vpop.f32.mrf.mxu2 }
 0x238   : > { %v430_v45 = vpop.xlane.xlu0 %429 }
 0x239   : > { %v431_v46 = vsub.f32 %v428_v43, %v430_v45 }
 0x23b   : > { %v432_v47 = vmul.f32 1.442695, %v431_v46 }
 0x23d   : > { %663 = vpow2.f32 %v432_v47 }
 0x243   : > { %v664_v48 = vpop.eup %663 }
 0x244   : > { %434 = vadd.xlane.f32.xlu0 %v664_v48 }
 0x2b7   : > { %v435_v49 = vpop.xlane.xlu0 %434 }
 0x2b8   : > { %665 = vlog2.f32 %v435_v49 }
 0x2be   : > { %v666_v50 = vpop.eup %665 }
 0x2bf   : > { %v437_v51 = vmul.f32 0.6931472, %v666_v50 }
 0x2c1   : > { %v438_v52 = vsub.f32 %v431_v46, %v437_v51 }
 0x2c3   : > { %v439_v53 = vsel %vm427_vm0, %v438_v52, %v422_v42 }
 0x2c4   : > { %441 = vst.msk [vmem:[%s182_s30] sm:$0xff] %vm440_vm1, %v439_v53 }
 0x2c5 PF: > { %s14_s12 = sadd.s32 1, %s707_s12  }
 0x2c6   : > { %p11_p7 = scmp.ge.s32.totalorder %s14_s12, 4  }
 0x2c8   :  { %13 = sbr.rel (!%p11_p7) target bundleno = 1 (0x1), region = 69 }
 0x2cd   :  { %461 = vsyncpa [#allocation3], 1 }
 0x2ce   :  { %463 = vsyncpa [#allocation3 + $0x1], 1 }

</bundles_post_ra>
